<compile_context>
chip_gen: v5e
topology: v5e:2x2
jax: 0.10.0
libtpu: 0.0.40
codegen_flags: <defaults>
</compile_context>

<pallas_src>
import jax
import jax.numpy as jnp
from jax.experimental import pallas as pl
from jax.experimental.pallas import tpu as pltpu


def _round_up(x, m):
    return -(-x // m) * m


def _embedding_gather_kernel(ids_ref, w_ref, out_ref):
    # ids_ref: (TQ, 1) int32 tile of flattened codes (VMEM)
    # w_ref:   (num_tokens, D) full codebook, resident in VMEM (constant index_map)
    # out_ref: (TQ, D) gathered rows
    tq = out_ref.shape[0]
    num_tokens = w_ref.shape[0]

    # Clamp in-kernel (free VALU slot; matches jnp.take's clip semantics.
    # PyTorch F.embedding would raise on out-of-range ids instead.)
    ids = jnp.clip(ids_ref[...], 0, num_tokens - 1)                    # (TQ, 1)

    token_iota = jax.lax.broadcasted_iota(jnp.int32, (tq, num_tokens), 1)
    onehot = (token_iota == ids).astype(w_ref.dtype)                   # (TQ, K)

    # Gather as a matmul on the MXU: one-hot selects rows of the codebook.
    out_ref[...] = jnp.dot(
        onehot, w_ref[...], preferred_element_type=jnp.float32
    ).astype(out_ref.dtype)


def embedding_ema_forward(embed_id, weight, *, tq_max=512):
    """out[...] = weight[embed_id[...], :]  (== F.embedding(embed_id, weight))."""
    num_tokens, codebook_dim = weight.shape

    # Lane-dense output guard: pad the codebook dim to a multiple of 128 so the
    # output stores are unmasked full-lane vst (no-op for D == 128).
    d_pad = _round_up(codebook_dim, 128)
    if d_pad != codebook_dim:
        weight = jnp.pad(weight, ((0, 0), (0, d_pad - codebook_dim)))

    ids_flat = embed_id.reshape(-1).astype(jnp.int32)
    n = ids_flat.shape[0]

    # Query-row tile: as large as possible (capped at tq_max, multiple of 8),
    # but never larger than half the (rounded-up) query count so the grid has
    # at least 2 steps whenever n allows it -> both v7x TensorCores get work
    # on the "parallel" axis.
    n8 = _round_up(n, 8)
    tq = max(8, min(tq_max, _round_up(pl.cdiv(n8, 2), 8)))
    n_pad = _round_up(n, tq)

    if n_pad > n:
        ids_flat = jnp.pad(ids_flat, (0, n_pad - n))   # pad with id 0 (valid row)
    ids_2d = ids_flat.reshape(n_pad, 1)

    out_flat = pl.pallas_call(
        _embedding_gather_kernel,
        out_shape=jax.ShapeDtypeStruct((n_pad, d_pad), weight.dtype),
        grid_spec=pltpu.PrefetchScalarGridSpec(
            num_scalar_prefetch=0,
            grid=(n_pad // tq,),
            in_specs=[
                # (TQ, 1) tile of indices; last dim equals full array extent.
                pl.BlockSpec((tq, 1), lambda i: (i, 0)),
                # Full codebook, constant block index => fetched once, stays
                # resident in VMEM across all query tiles (16 KiB here).
                pl.BlockSpec((num_tokens, d_pad), lambda i: (0, 0)),
            ],
            out_specs=pl.BlockSpec((tq, d_pad), lambda i: (i, 0)),
        ),
        compiler_params=pltpu.CompilerParams(
            # Each output row tile is independent -> shard across TCs on v7x.
            dimension_semantics=("parallel",),
            # Usage is < 1 MiB at these shapes; keep an explicit, conservative
            # scoped-VMEM budget (safe on v5e/v6e/v7x).
            vmem_limit_bytes=32 * 1024 * 1024,
        ),
    )(ids_2d, weight)

    if n_pad > n:
        out_flat = out_flat[:n]
    if d_pad != codebook_dim:
        out_flat = out_flat[:, :codebook_dim]
    return out_flat.reshape(embed_id.shape + (codebook_dim,))


class EmbeddingEMA:
    """JAX mirror of the PyTorch EmbeddingEMA module (forward via Pallas)."""

    def __init__(self, num_tokens, codebook_dim, decay=0.99, eps=1e-5, key=None):
        self.decay = decay
        self.eps = eps
        if key is None:
            key = jax.random.PRNGKey(0)
        weight = jax.random.normal(key, (num_tokens, codebook_dim), dtype=jnp.float32)
        self.weight = weight
        self.cluster_size = jnp.zeros((num_tokens,), dtype=jnp.float32)
        self.embed_avg = weight.copy()

    def forward(self, embed_id):
        return embedding_ema_forward(embed_id, self.weight)

    # EMA buffer updates are trivial elementwise ops; a Pallas kernel is not
    # warranted, so they are plain JAX (functional, in-place-free).
    def cluster_size_ema_update(self, new_cluster_size):
        self.cluster_size = (
            self.cluster_size * self.decay + new_cluster_size * (1.0 - self.decay)
        )

    def embed_avg_ema_update(self, new_embed_avg):
        self.embed_avg = (
            self.embed_avg * self.decay + new_embed_avg * (1.0 - self.decay)
        )

    def weight_update(self, num_tokens):
        n = self.cluster_size.sum()
        smoothed = (self.cluster_size + self.eps) / (n + num_tokens * self.eps) * n
        self.weight = self.embed_avg / smoothed[:, None]


if __name__ == "__main__":
    key = jax.random.PRNGKey(0)
    k_w, k_id = jax.random.split(key)

    num_tokens = 32
    codebook_dim = 128
    module = EmbeddingEMA(num_tokens, codebook_dim, key=k_w)

    # embed_id: [B, H, W] integer code map (e.g. from a VQ over an NCHW feature map)
    embed_id = jax.random.randint(k_id, (2, 8, 8), 0, num_tokens, dtype=jnp.int32)

    out = module.forward(embed_id)
    out = jax.block_until_ready(out)

    # Reference check against plain JAX gather (== F.embedding semantics).
    ref = jnp.take(module.weight, embed_id, axis=0)
    assert out.shape == (2, 8, 8, codebook_dim), out.shape
    assert out.dtype == module.weight.dtype
    assert jnp.allclose(out, ref), "mismatch vs reference embedding lookup"

    print("KERNEL_OK")
</pallas_src>

<mosaic_0001>
module attributes {stable_mosaic.version = 11 : i64} {
  func.func @_embedding_gather_kernel(%arg0: i32, %arg1: memref<64x1xi32, #tpu.memory_space<vmem>>, %arg2: memref<32x128xf32, #tpu.memory_space<vmem>>, %arg3: memref<64x128xf32, #tpu.memory_space<vmem>>) attributes {dimension_semantics = [#tpu.dimension_semantics<parallel>], iteration_bounds = array<i64: 2>, scalar_prefetch = 0 : i64, scratch_operands = 0 : i64, tpu.core_type = #tpu.core_type<tc>, window_params = [{transform_indices = @transform_0, window_bounds = array<i64: 64, 1>}, {pipeline_mode = #tpu.pipeline_mode<synchronous>, transform_indices = @transform_1, window_bounds = array<i64: 32, 128>}, {transform_indices = @transform_2, window_bounds = array<i64: 64, 128>}]} {
    %c0 = arith.constant 0 : index
    %c0_0 = arith.constant 0 : index
    %0 = vector.load %arg1[%c0, %c0_0] : memref<64x1xi32, #tpu.memory_space<vmem>>, vector<64x1xi32>
    %c0_i32 = arith.constant 0 : i32
    %c31_i32 = arith.constant 31 : i32
    %1 = vector.broadcast %c0_i32 : i32 to vector<64x1xi32>
    %2 = arith.maxsi %1, %0 : vector<64x1xi32>
    %3 = vector.broadcast %c31_i32 : i32 to vector<64x1xi32>
    %4 = arith.minsi %3, %2 : vector<64x1xi32>
    %5 = tpu.iota {dimensions = array<i32: 1>} : vector<64x32xi32>
    %6 = vector.broadcast %4 : vector<64x1xi32> to vector<64x32xi32>
    %7 = arith.cmpi eq, %5, %6 : vector<64x32xi32>
    %8 = arith.extui %7 : vector<64x32xi1> to vector<64x32xi32>
    %9 = arith.sitofp %8 : vector<64x32xi32> to vector<64x32xf32>
    %c0_1 = arith.constant 0 : index
    %c0_2 = arith.constant 0 : index
    %10 = vector.load %arg2[%c0_1, %c0_2] : memref<32x128xf32, #tpu.memory_space<vmem>>, vector<32x128xf32>
    %cst = arith.constant dense<0.000000e+00> : vector<64x128xf32>
    %11 = tpu.matmul %9, %10, %cst {dimension_numbers = #tpu.dot_dimension_numbers<[1], [0], [0], [1], [0, 0, 1, 1], [], []>} : vector<64x32xf32>, vector<32x128xf32>, vector<64x128xf32> -> vector<64x128xf32>
    %c0_3 = arith.constant 0 : index
    %c0_4 = arith.constant 0 : index
    %12 = vector.load %arg3[%c0_3, %c0_4] : memref<64x128xf32, #tpu.memory_space<vmem>>, vector<64x128xf32>
    tpu.vector_store %arg3[%c0_3, %c0_4], %11 {strides = array<i32>} : memref<64x128xf32, #tpu.memory_space<vmem>>, vector<64x128xf32>,
    return
  }
  func.func @transform_0(%arg0: i32) -> (i32, i32) {
    %c0_i32 = arith.constant 0 : i32
    %c0_i32_0 = arith.constant 0 : i32
    return %arg0, %c0_i32 : i32, i32
  }
  func.func @transform_1(%arg0: i32) -> (i32, i32) {
    %c0_i32 = arith.constant 0 : i32
    %c0_i32_0 = arith.constant 0 : i32
    %c0_i32_1 = arith.constant 0 : i32
    return %c0_i32, %c0_i32_0 : i32, i32
  }
  func.func @transform_2(%arg0: i32) -> (i32, i32) {
    %c0_i32 = arith.constant 0 : i32
    %c0_i32_0 = arith.constant 0 : i32
    return %arg0, %c0_i32 : i32, i32
  }
}

</mosaic_0001>

<bundles_post_ra>
// kernel: tpu_custom_call.1
= control target key start
LH: loop header
LB: loop body
LE: loop exit
PB: predicated region body
PF: predicated region fallthrough
CT: control target
= control target key end

     0   :  { %7 = vsyncpa [#allocation3], 0  ;;  %s665_s0 = inlined_call_operand.vmem [shape: s32[128,1], index: 0, kind: input, shape index: {}]   ;;  %s666_s1 = inlined_call_operand.vmem [shape: f32[32,128], index: 1, kind: input, shape index: {}]   ;;  %s667_s2 = inlined_call_operand.hbm [shape: f32[128,128], index: 2, kind: output, shape index: {}]  }
   0x1   :  { %9 = vsyncpa [#allocation3 + $0x1], 0  ;;  %s561_s9 = smov 0   ;;  %s563_s10 = smov 0  }
   0x2   :  { %s565_s11 = smov 0   ;;  %s567_s12 = smov 0  }
   0x3 LB: > { %s582_s13 = sadd.s32 4294967295, %s540_s12   ;;  %s391_s14 = sadd.s32 4294967294, %s540_s12   ;;  %s540_s12 = sphi %s567_s12, %s673_s12   ;;  %s536_s11 = sphi %s565_s11, %s672_s11   ;;  %s532_s10 = sphi %s563_s10, %s671_s10   ;;  %s528_s9 = sphi %s561_s9, %s670_s9  }
   0x4   : > { %s586_s15 = sadd.s32 1, %s540_s12   ;;  %s69_s16 = sadd.s32 1, %s536_s11 }
   0x5   : > { %s66_s17 = ssub.s32 %s540_s12, %s586_s15  ;;  %p79_p0 = scmp.ne.s32.totalorder %s536_s11, %s532_s10 }
   0x6   : > { %p67_p1 = scmp.eq.s32.totalorder %s66_s17, 0  ;;  %p80_p2 = scmp.eq.s32.totalorder %s582_s13, 1 }
   0x7   : > { %p85_p3 = scmp.ne.s32.totalorder %s532_s10, %s528_s9  ;;  %p86_p4 = scmp.eq.s32.totalorder %s391_s14, 1 }
   0x8   : > { %s597_s18 = scalar_select %p67_p1, %s536_s11, %s69_s16  }
   0x9   : > { %p599_p5 = por %p80_p2, %p79_p0  ;;  %p603_p6 = por %p86_p4, %p85_p3 }
   0xa   : > { %p394_p7 = scmp.ge.s32.totalorder %s540_s12, 1  ;;  %p116_p8 = scmp.lt.s32.totalorder %s540_s12, 3 }
   0xc   : > { %p117_p9 = pnand %p394_p7, %p116_p8 }
   0xd   : > { %s396_s21 = sshll.u32 (!%p117_p9), %s582_s13, 3  ;;  %s135_s6 = sand.u32 (!%p117_p9), 1, %s532_s10  }
   0xe   : > { %120 = sbr.rel (%p117_p9) target bundleno = 296 (0x128), region = 28  ;;  %p139_p10 = scmp.lt.s32.totalorder (!%p117_p9), %s396_s21, 15 }
   0xf   : > { %s395_s7 = sshll.u32 (!%p117_p9), %s135_s6, 6  ;;  %s419_s14 = sshll.u32 (!%p117_p9), %s582_s13, 6 }
  0x10   : > { %s137_s8 = scalar_lea.vmem (!%p117_p9), [#allocation2], %s395_s7  ;;  %s314_s13 = scalar_lea.sflag (!%p117_p9), [#allocation3], %s135_s6 }
  0x11   : > { %s326_s22 = sshll.u32 (!%p117_p9), %s137_s8, 4  ;;  %s327_s22 = int_to_ptr.vmem [resolvable:$true] %s326_s22 }
  0x13   : > { %v238_v0 = vld [vmem:[%s666_s1 + $0x18] sm:$0xff]  ;;  %v542_v1 = vmov 0   ;;  %v237_v2 = vld [vmem:[%s666_s1 + $0x10] sm:$0xff]  ;;  %s675_s21 = smov (!%p139_p10, %s396_s21), 15  ;;  %v236_v3 = vld [vmem:[%s666_s1 + $0x8] sm:$0xff]  ;;  %v185_v29 = vlaneseq  ;;  %v543_v33 = vmov 0.0  }
  0x14   : > { %476 = vset.pattern.permute.xlu1 %v542_v1  ;;  %475 = vset.pattern.permute.xlu0 %v542_v1  ;;  %s397_s28 = sshll.u32 %s675_s21, 3  ;;  %v235_v28 = vld [vmem:[%s666_s1] sm:$0xff]  ;;  %s325_s21 = scalar_lea.hbm %s667_s2, %s419_s14 }
  0x15   : > { %477 = vset.pattern.permute.xlu2 %v542_v1  ;;  %421 = vmatpush.msra.mxu2 %v238_v0  ;;  %s142_s3 = scalar_lea.vmem %s665_s0, %s397_s28  ;;  %v186_v30 = vand.u32 127, %v185_v29  ;;  %s328_s23 = sshll.u32 %s325_s21, 4  ;;  %s329_s23 = int_to_ptr.hbm [resolvable:$true] %s328_s23 }
  0x16   : > { %276 = vmatpush.msra.mxu0 %v238_v0  ;;  %420 = vmatpush.msra.mxu1 %v238_v0  ;;  %v149_v4 = vld [vmem:[%s142_s3 + $0x20] sm:$0xff]  ;;  %v151_v6 = vld [vmem:[%s142_s3 + $0x30] sm:$0xff]  ;;  %v150_v10 = vld [vmem:[%s142_s3 + $0x28] sm:$0xff]  ;;  %s492_s24 = sshra.s32 %s329_s23, 4  ;;  %s498_s28 = scalar_lea.hbm %s667_s2, 128  ;;  %s493_s24 = int_to_ptr.hbm [resolvable:$true] %s492_s24 }
  0x17   : > { %424 = vmatpush.msra.mxu2 %v237_v2  ;;  %422 = vmatpush.msra.mxu3 %v238_v0  ;;  %v145_v5 = vld [vmem:[%s142_s3] sm:$0xff]  ;;  %vm161_vm0 = vcmp.gt.s32.totalorder %v149_v4, 0  ;;  %vm165_vm2 = vcmp.gt.s32.totalorder %v151_v6, 0  ;;  %v147_v7 = vld [vmem:[%s142_s3 + $0x10] sm:$0xff]  ;;  %v152_v11 = vld [vmem:[%s142_s3 + $0x38] sm:$0xff]  ;;  %vm163_vm6 = vcmp.gt.s32.totalorder %v150_v10, 0  ;;  %p499_p0 = scmp.lt.s32.totalorder %s493_s24, %s667_s2 }
  0x18   : > { %277 = vmatpush.msra.mxu0 %v237_v2  ;;  %423 = vmatpush.msra.mxu1 %v237_v2  ;;  %vm153_vm1 = vcmp.gt.s32.totalorder %v145_v5, 0  ;;  %v162_v8 = vsel %vm161_vm0, %v149_v4, 0  ;;  %vm157_vm3 = vcmp.gt.s32.totalorder %v147_v7, 0  ;;  %v166_v14 = vsel %vm165_vm2, %v151_v6, 0  ;;  %v146_v16 = vld [vmem:[%s142_s3 + $0x8] sm:$0xff]  ;;  %v148_v17 = vld [vmem:[%s142_s3 + $0x18] sm:$0xff] }
  0x19   : > { %427 = vmatpush.msra.mxu2 %v236_v3  ;;  %425 = vmatpush.msra.mxu3 %v237_v2  ;;  %v154_v9 = vsel %vm153_vm1, %v145_v5, 0  ;;  %vm177_vm4 = vcmp.lt.s32.totalorder %v162_v8, 31  ;;  %v158_v15 = vsel %vm157_vm3, %v147_v7, 0  ;;  %v164_v18 = vsel %vm163_vm6, %v150_v10, 0  ;;  %s494_s25 = scalar_lea.hbm %s493_s24, 64 }
  0x1a   : > { %278 = vmatpush.msra.mxu0 %v236_v3  ;;  %426 = vmatpush.msra.mxu1 %v236_v3  ;;  %vm169_vm5 = vcmp.lt.s32.totalorder %v154_v9, 31  ;;  %v178_v12 = vsel %vm177_vm4, %v162_v8, 31  ;;  %vm167_vm7 = vcmp.gt.s32.totalorder %v152_v11, 0  ;;  %vm181_vm8 = vcmp.lt.s32.totalorder %v166_v14, 31  ;;  %p495_p11 = scmp.ne.s32.totalorder %s493_s24, %s494_s25  ;;  %p500_p1 = scmp.lt.s32.totalorder %s498_s28, %s494_s25 }
  0x1b   : > { %428 = vmatpush.msra.mxu3 %v236_v3  ;;  %v170_v13 = vsel %vm169_vm5, %v154_v9, 31  ;;  %200 = vperm.xlu0 %475, %v178_v12   ;;  %vm173_vm9 = vcmp.lt.s32.totalorder %v158_v15, 31  ;;  %vm179_vm10 = vcmp.lt.s32.totalorder %v164_v18, 31  ;;  %v168_v20 = vsel %vm167_vm7, %v152_v11, 0 }
  0x1c   : > { %188 = vperm.xlu1 %476, %v170_v13   ;;  %v180_v19 = vsel %vm179_vm10, %v164_v18, 31  ;;  %vm155_vm11 = vcmp.gt.s32.totalorder %v146_v16, 0  ;;  %vm159_vm12 = vcmp.gt.s32.totalorder %v148_v17, 0  ;;  %v182_v21 = vsel %vm181_vm8, %v166_v14, 31  ;;  %430 = vmatpush.msra.mxu2 %v235_v28  ;;  %p496_p12 = pnand %p495_p11, %p599_p5  ;;  %p501_p2 = por %p500_p1, %p499_p0 }
  0x1d   : > { %203 = vperm.xlu2 %477, %v180_v19   ;;  %v174_v22 = vsel %vm173_vm9, %v158_v15, 31  ;;  %vm183_vm13 = vcmp.lt.s32.totalorder %v168_v20, 31  ;;  %v156_v23 = vsel %vm155_vm11, %v146_v16, 0  ;;  %v160_v24 = vsel %vm159_vm12, %v148_v17, 0  ;;  %279 = vmatpush.msra.mxu0 %v235_v28 }
  0x1e   : > { %v184_v25 = vsel %vm183_vm13, %v168_v20, 31  ;;  %vm171_vm14 = vcmp.lt.s32.totalorder %v156_v23, 31  ;;  %vm175_vm15 = vcmp.lt.s32.totalorder %v160_v24, 31  ;;  %429 = vmatpush.msra.mxu1 %v235_v28  ;;  %431 = vmatpush.msra.mxu3 %v235_v28  ;;  %vm239_vm0 = vcmask 261120   ;;  %p497_p13 = pneg %p496_p12 }
  0x1f   : > { %v172_v26 = vsel %vm171_vm14, %v156_v23, 31  ;;  %v176_v27 = vsel %vm175_vm15, %v160_v24, 31 }
  0x20   : > { %p502_p3 = pnand %p501_p2, %p497_p13 }
  0x23   : > { %206 = vperm.xlu0 %475, %v182_v21  }
  0x24   : > { %194 = vperm.xlu1 %476, %v174_v22  }
  0x25   : > { %209 = vperm.xlu2 %477, %v184_v25  }
  0x2b   : > { %191 = vperm.xlu0 %475, %v172_v26  }
  0x2c   : > { %197 = vperm.xlu1 %476, %v176_v27  }
  0x77   : > { %v204_v36 = vpop.permute.xlu2 %203 }
  0x78   : > { %vm216_vm3 = vcmp.eq.s32.totalorder %v186_v30, %v204_v36 }
  0x79   : > { %v403_v37 = vsel %vm216_vm3, 1.0, %v543_v33 }
  0x7f   : > { %v210_v42 = vpop.permute.xlu2 %209 }
  0x80   : > { %vm218_vm6 = vcmp.eq.s32.totalorder %v186_v30, %v210_v42 }
  0x81   : > { %v405_v47 = vsel %vm218_vm6, 1.0, %v543_v33 }
  0x8d   : > { %v201_v31 = vpop.permute.xlu0 %200 }
  0x8e   : > { %v189_v32 = vpop.permute.xlu1 %188  ;;  %vm215_vm1 = vcmp.eq.s32.totalorder %v186_v30, %v201_v31 }
  0x8f   : > { %vm211_vm2 = vcmp.eq.s32.totalorder %v186_v30, %v189_v32  ;;  %v402_v34 = vsel %vm215_vm1, 1.0, %v543_v33 }
  0x90   : > { %v398_v35 = vsel %vm211_vm2, 1.0, %v543_v33  ;;  %410 = vmatmul.msk.f32.vlgmr.msra.gmra.mxu2 %vm239_vm0, %v402_v34 }
  0x91   : > { %406 = vmatmul.msk.f32.vlgmr.msra.gmra.mxu0 %vm239_vm0, %v398_v35 }
  0x95   : > { %v207_v38 = vpop.permute.xlu0 %206 }
  0x96   : > { %v195_v39 = vpop.permute.xlu1 %194  ;;  %vm217_vm4 = vcmp.eq.s32.totalorder %v186_v30, %v207_v38 }
  0x97   : > { %vm213_vm5 = vcmp.eq.s32.totalorder %v186_v30, %v195_v39  ;;  %v404_v40 = vsel %vm217_vm4, 1.0, %v543_v33 }
  0x98   : > { %v400_v41 = vsel %vm213_vm5, 1.0, %v543_v33  ;;  %411 = vmatmul.msk.f32.gmra.mxu2 %vm239_vm0, %v403_v37  ;;  %412 = vmatmul.msk.f32.vlgmr.msra.gmra.mxu3 %vm239_vm0, %v404_v40 }
  0x99   : > { %408 = vmatmul.msk.f32.vlgmr.msra.gmra.mxu1 %vm239_vm0, %v400_v41 }
  0x9d   : > { %v192_v43 = vpop.permute.xlu0 %191 }
  0x9e   : > { %v198_v44 = vpop.permute.xlu1 %197  ;;  %vm212_vm7 = vcmp.eq.s32.totalorder %v186_v30, %v192_v43 }
  0x9f   : > { %vm214_vm8 = vcmp.eq.s32.totalorder %v186_v30, %v198_v44  ;;  %v399_v45 = vsel %vm212_vm7, 1.0, %v543_v33 }
  0xa0   : > { %v401_v46 = vsel %vm214_vm8, 1.0, %v543_v33  ;;  %407 = vmatmul.msk.f32.gmra.mxu0 %vm239_vm0, %v399_v45  ;;  %413 = vmatmul.msk.f32.gmra.mxu3 %vm239_vm0, %v405_v47 }
  0xa1   : > { %409 = vmatmul.msk.f32.gmra.mxu1 %vm239_vm0, %v401_v46 }
 0x10e   : > { %v281_v48 = vpop.f32.mrf.mxu0 }
 0x10f   : > { %305 = vst [vmem:[%s137_s8] sm:$0xff] %v281_v48 }
 0x113   : > { %v293_v49 = vpop.f32.mrf.mxu2 }
 0x114   : > { %309 = vst [vmem:[%s137_s8 + $0x20] sm:$0xff] %v293_v49 }
 0x116   : > { %v287_v50 = vpop.f32.mrf.mxu1 }
 0x117   : > { %307 = vst [vmem:[%s137_s8 + $0x10] sm:$0xff] %v287_v50 }
 0x11b   : > { %v296_v51 = vpop.f32.mrf.mxu2  ;;  %v299_v52 = vpop.f32.mrf.mxu3 }
 0x11c   : > { %310 = vst [vmem:[%s137_s8 + $0x28] sm:$0xff] %v296_v51 }
 0x11d   : > { %311 = vst [vmem:[%s137_s8 + $0x30] sm:$0xff] %v299_v52  ;;  %v284_v53 = vpop.f32.mrf.mxu0 }
 0x11e   : > { %v290_v54 = vpop.f32.mrf.mxu1  ;;  %306 = vst [vmem:[%s137_s8 + $0x8] sm:$0xff] %v284_v53 }
 0x11f   : > { %308 = vst [vmem:[%s137_s8 + $0x18] sm:$0xff] %v290_v54 }
 0x123   : > { %v302_v55 = vpop.f32.mrf.mxu3 }
 0x124   : > { %312 = vst [vmem:[%s137_s8 + $0x38] sm:$0xff] %v302_v55 }
 0x125   : > { %505 = shalt.err (!%p502_p3)
}
 0x126   : > { %s544_s3 = smov 128   ;;  %s545_s4 = smov 8  }
 0x127   : > { %432 = dma.vmem_to_hbm [thread:$0]  (%p599_p5), %s327_s22, 1024, %s329_s23, %s314_s13, %s544_s3, %s544_s3, %s545_s4  }
 0x128 PF: > { %p438_p4 = scmp.ge.s32.totalorder %s540_s12, 2  ;;  %s343_s5 = sand.u32 1, %s528_s9  }
 0x129   : > { %s344_s6 = scalar_lea.sflag [#allocation3], %s343_s5 }
 0x12a   : > { %p435_p7 = pnand %p438_p4, %p603_p6 }
 0x12c   : > { %p436_p8 = pneg %p435_p7 }
 0x12e   : > { %523 = dma.done.wait (%p436_p8), %s344_s6, 1024  }
 0x12f   : > { %525 = vsyncadd (%p436_p8), %s344_s6, 4294966272  ;;  %p12_p9 = scmp.ge.s32.totalorder %s586_s15, 4   ;;  %s670_s9 = smov %s532_s10 }
 0x130   : > { %s671_s10 = smov %s536_s11  ;;  %s672_s11 = smov %s597_s18 }
 0x131   : > { %s673_s12 = smov %s586_s15  ;;  %14 = sbr.rel (!%p12_p9) target bundleno = 3 (0x3), region = 63 }
 0x136   :  { %350 = vsyncpa [#allocation3], 1 }
 0x137   :  { %352 = vsyncpa [#allocation3 + $0x1], 1 }

</bundles_post_ra>
